<compile_context>
chip_gen: v5e
topology: v5e:2x2
jax: 0.10.0
libtpu: 0.0.40
codegen_flags: <defaults>
</compile_context>

<pallas_src>
import functools

import jax
import jax.numpy as jnp
from jax.experimental import pallas as pl
from jax.experimental.pallas import tpu as pltpu


def _round_up(x, m):
    return ((x + m - 1) // m) * m


def _sum_lane_chunks(x_ref, n_full, tail):
    """Sum static 128-lane chunks of the (r_tile, hw_tile) tile into (r_tile, 128) f32.

    Pure VPU adds on lane-aligned slices (no cross-lane XLU work). `tail` > 0
    masks the boundary chunk so garbage lanes of a partial spatial block never
    reach the accumulator. All slice bounds are Python-static.
    """
    parts = []
    for c in range(n_full):
        parts.append(x_ref[:, c * 128:(c + 1) * 128].astype(jnp.float32))
    if tail:
        c = n_full
        chunk = x_ref[:, c * 128:(c + 1) * 128].astype(jnp.float32)
        lane = jax.lax.broadcasted_iota(jnp.int32, chunk.shape, 1)
        parts.append(jnp.where(lane < tail, chunk, 0.0))
    s = parts[0]
    for p in parts[1:]:
        s = s + p
    return s


def _gap_kernel(x_ref, o_ref, acc_ref, *, hw_tile, last_valid, inv_hw):
    # x_ref:   (r_tile, hw_tile) tile of the flattened (rows, HW) input
    # o_ref:   (r_tile, 1) output tile (resident across the reduction axis)
    # acc_ref: (r_tile, 128) f32 VMEM accumulator (per-lane partial sums)
    k = pl.program_id(1)
    nk = pl.num_programs(1)

    @pl.when(k == 0)
    def _():
        acc_ref[...] = jnp.zeros_like(acc_ref)

    n_chunks = hw_tile // 128

    if last_valid == hw_tile:
        # HW divisible by hw_tile: every spatial tile is full, no masking.
        acc_ref[...] += _sum_lane_chunks(x_ref, n_chunks, 0)
    else:
        @pl.when(k < nk - 1)
        def _():
            acc_ref[...] += _sum_lane_chunks(x_ref, n_chunks, 0)

        @pl.when(k == nk - 1)
        def _():
            # Boundary spatial tile: only `last_valid` lanes are real data.
            acc_ref[...] += _sum_lane_chunks(
                x_ref, last_valid // 128, last_valid % 128
            )

    @pl.when(k == nk - 1)
    def _():
        # Single cross-lane reduce + scale, once per row tile (epilogue only).
        row_sum = jnp.sum(acc_ref[...], axis=-1, keepdims=True)  # (r_tile, 1)
        o_ref[...] = (row_sum * inv_hw).astype(o_ref.dtype)


def global_avg_pool2d(x, *, r_tile=512, hw_tile=2048):
    """x: (N, C, H, W) -> (N, C), mean over spatial dims."""
    N, C, H, W = x.shape
    HW = H * W
    rows = N * C

    itemsize = jnp.dtype(x.dtype).itemsize
    # Sublane multiple respecting dtype packing (f32: 8, bf16/f16: 16, 8-bit: 32).
    sub = 8 * max(1, 4 // itemsize)

    # Lane tile: multiple of 128, clamped to the problem; row tile: multiple of
    # `sub`, clamped to the problem. Blocks may overhang the array (partial
    # blocks are handled by Pallas; overhanging lanes are masked in-kernel,
    # overhanging rows are dropped by masked writeback).
    hw_tile = min(hw_tile, _round_up(HW, 128))
    r_tile = min(_round_up(r_tile, sub), _round_up(rows, sub))

    grid = (pl.cdiv(rows, r_tile), pl.cdiv(HW, hw_tile))
    nk = grid[1]
    last_valid = HW - (nk - 1) * hw_tile  # static: valid lanes in the last spatial tile
    inv_hw = 1.0 / float(HW)

    x2 = x.reshape(rows, HW)  # contiguous reshape: no data movement

    kernel = functools.partial(
        _gap_kernel, hw_tile=hw_tile, last_valid=last_valid, inv_hw=inv_hw
    )

    out = pl.pallas_call(
        kernel,
        out_shape=jax.ShapeDtypeStruct((rows, 1), x.dtype),
        grid_spec=pltpu.PrefetchScalarGridSpec(
            num_scalar_prefetch=0,
            grid=grid,
            in_specs=[pl.BlockSpec((r_tile, hw_tile), lambda r, k: (r, k))],
            out_specs=pl.BlockSpec((r_tile, 1), lambda r, k: (r, 0)),
            scratch_shapes=[pltpu.VMEM((r_tile, 128), jnp.float32)],
        ),
        compiler_params=pltpu.CompilerParams(
            dimension_semantics=("parallel", "arbitrary"),
        ),
        cost_estimate=pl.CostEstimate(
            flops=rows * HW,
            transcendentals=0,
            bytes_accessed=rows * HW * itemsize + rows * itemsize,
        ),
    )(x2)

    return out[:, 0].reshape(N, C)


if __name__ == "__main__":
    key = jax.random.PRNGKey(0)
    N, C, H, W = 2, 4, 16, 16
    x = jax.random.normal(key, (N, C, H, W), dtype=jnp.float32)

    out = global_avg_pool2d(x)
    out = jax.block_until_ready(out)

    # correctness check vs. plain JAX reference (same semantics as torch .mean(dim=2))
    ref = x.reshape(N, C, -1).mean(axis=2)
    assert out.shape == (N, C)
    assert jnp.allclose(out, ref, atol=1e-5, rtol=1e-5), "mismatch vs reference"

    # extra check: non-aligned spatial size exercises the in-kernel lane masking
    H2, W2 = 7, 7
    x2 = jax.random.normal(jax.random.PRNGKey(1), (N, C, H2, W2), dtype=jnp.float32)
    out2 = jax.block_until_ready(global_avg_pool2d(x2))
    ref2 = x2.reshape(N, C, -1).mean(axis=2)
    assert jnp.allclose(out2, ref2, atol=1e-5, rtol=1e-5), "mismatch vs reference (7x7)"

    print("KERNEL_OK")
</pallas_src>

<mosaic_0001>
module attributes {stable_mosaic.version = 11 : i64} {
  func.func @_gap_kernel(%arg0: i32, %arg1: i32, %arg2: memref<8x256xf32, #tpu.memory_space<vmem>>, %arg3: memref<8x1xf32, #tpu.memory_space<vmem>>, %arg4: memref<8x128xf32, #tpu.memory_space<vmem>>) attributes {dimension_semantics = [#tpu.dimension_semantics<parallel>, #tpu.dimension_semantics<arbitrary>], iteration_bounds = array<i64: 1, 1>, scalar_prefetch = 0 : i64, scratch_operands = 1 : i64, tpu.core_type = #tpu.core_type<tc>, window_params = [{transform_indices = @transform_0, window_bounds = array<i64: 8, 256>}, {transform_indices = @transform_1, window_bounds = array<i64: 8, 1>}]} {
    %c0_i32 = arith.constant 0 : i32
    %0 = arith.cmpi eq, %arg1, %c0_i32 : i32
    %1 = arith.extui %0 : i1 to i32
    %c0_i32_0 = arith.constant 0 : i32
    %2 = arith.cmpi ne, %1, %c0_i32_0 : i32
    scf.if %2 {
      %cst = arith.constant 0.000000e+00 : f32
      %12 = vector.broadcast %cst : f32 to vector<8x128xf32>
      %c0_9 = arith.constant 0 : index
      %c0_10 = arith.constant 0 : index
      %13 = vector.load %arg4[%c0_9, %c0_10] : memref<8x128xf32, #tpu.memory_space<vmem>>, vector<8x128xf32>
      tpu.vector_store %arg4[%c0_9, %c0_10], %12 {strides = array<i32>} : memref<8x128xf32, #tpu.memory_space<vmem>>, vector<8x128xf32>,
    } else {
    }
    %c0 = arith.constant 0 : index
    %c0_1 = arith.constant 0 : index
    %3 = vector.load %arg4[%c0, %c0_1] : memref<8x128xf32, #tpu.memory_space<vmem>>, vector<8x128xf32>
    %c0_2 = arith.constant 0 : index
    %c0_3 = arith.constant 0 : index
    %4 = vector.load %arg2[%c0_2, %c0_3] : memref<8x256xf32, #tpu.memory_space<vmem>>, vector<8x128xf32>
    %c0_4 = arith.constant 0 : index
    %c128 = arith.constant 128 : index
    %5 = vector.load %arg2[%c0_4, %c128] : memref<8x256xf32, #tpu.memory_space<vmem>>, vector<8x128xf32>
    %6 = arith.addf %4, %5 : vector<8x128xf32>
    %7 = arith.addf %3, %6 : vector<8x128xf32>
    %c0_5 = arith.constant 0 : index
    %c0_6 = arith.constant 0 : index
    %8 = vector.load %arg4[%c0_5, %c0_6] : memref<8x128xf32, #tpu.memory_space<vmem>>, vector<8x128xf32>
    tpu.vector_store %arg4[%c0_5, %c0_6], %7 {strides = array<i32>} : memref<8x128xf32, #tpu.memory_space<vmem>>, vector<8x128xf32>,
    %c0_i32_7 = arith.constant 0 : i32
    %9 = arith.cmpi eq, %arg1, %c0_i32_7 : i32
    %10 = arith.extui %9 : i1 to i32
    %c0_i32_8 = arith.constant 0 : i32
    %11 = arith.cmpi ne, %10, %c0_i32_8 : i32
    scf.if %11 {
      %c0_9 = arith.constant 0 : index
      %c0_10 = arith.constant 0 : index
      %12 = vector.load %arg4[%c0_9, %c0_10] : memref<8x128xf32, #tpu.memory_space<vmem>>, vector<8x128xf32>
      %cst = arith.constant dense<0.000000e+00> : vector<8xf32>
      %13 = vector.multi_reduction <add>, %12, %cst [1] : vector<8x128xf32> to vector<8xf32>
      %14 = vector.shape_cast %13 : vector<8xf32> to vector<8x1xf32>
      %cst_11 = arith.constant 3.906250e-03 : f32
      %15 = vector.broadcast %cst_11 : f32 to vector<8x1xf32>
      %16 = arith.mulf %14, %15 : vector<8x1xf32>
      %c0_12 = arith.constant 0 : index
      %c0_13 = arith.constant 0 : index
      %17 = vector.load %arg3[%c0_12, %c0_13] : memref<8x1xf32, #tpu.memory_space<vmem>>, vector<8x1xf32>
      tpu.vector_store %arg3[%c0_12, %c0_13], %16 {strides = array<i32>} : memref<8x1xf32, #tpu.memory_space<vmem>>, vector<8x1xf32>,
    } else {
    }
    return
  }
  func.func @transform_0(%arg0: i32, %arg1: i32) -> (i32, i32) {
    %c0_i32 = arith.constant 0 : i32
    return %arg0, %arg1 : i32, i32
  }
  func.func @transform_1(%arg0: i32, %arg1: i32) -> (i32, i32) {
    %c0_i32 = arith.constant 0 : i32
    %c0_i32_0 = arith.constant 0 : i32
    return %arg0, %c0_i32 : i32, i32
  }
}

</mosaic_0001>

<bundles_post_ra>
// kernel: tpu_custom_call.1
= control target key start
LH: loop header
LB: loop body
LE: loop exit
PB: predicated region body
PF: predicated region fallthrough
CT: control target
= control target key end

     0   :  { %6 = vsyncpa [#allocation4], 0  ;;  %s74_s9 = smov [#allocation3]   ;;  %s91_s0 = inlined_call_operand.hbm [shape: f32[8,256], index: 0, kind: input, shape index: {}]   ;;  %s92_s1 = inlined_call_operand.vmem [shape: f32[8,1], index: 1, kind: output, shape index: {}]  }
   0x1   :  { %s12_s8 = sshll.u32 %s91_s0, 4  ;;  %s14_s10 = sshll.u32 %s74_s9, 4  ;;  %s13_s8 = int_to_ptr.hbm [resolvable:$true] %s12_s8  ;;  %s15_s10 = int_to_ptr.vmem [resolvable:$true] %s14_s10 }
   0x2   :  { %17 = dma.hbm_to_vmem [thread:$0]  %s13_s8, 256, %s15_s10, [#allocation4]  }
   0x3   :  { %72 = dma.done.wait [#allocation4], 256  }
   0x4   :  { %73 = vsyncadd [#allocation4], 4294967040  ;;  %v28_v0 = vld [vmem:[#allocation3] sm:$0xff]  ;;  %v29_v1 = vld [vmem:[#allocation3 + $0x8] sm:$0xff]  ;;  %vm40_vm0 = vcmask 7168  }
   0x5   :  { %v30_v2 = vadd.f32 %v29_v1, %v28_v0 }
   0x7   :  { %37 = vadd.xlane.f32.xlu0 %v30_v2 }
  0x7a   :  { %v38_v3 = vpop.xlane.xlu0 %37 }
  0x7b   :  { %v39_v4 = vmul.f32 0.00390625, %v38_v3 }
  0x7d   :  { %41 = vst.msk [vmem:[%s92_s1] sm:$0xff] %vm40_vm0, %v39_v4 }
  0x7e   :  { %46 = vsyncpa [#allocation4], 1 }

</bundles_post_ra>
